<compile_context>
chip_gen: v6e
topology: v6e:2x2x1
jax: 0.10.0
libtpu: 0.0.40
codegen_flags: <defaults>
</compile_context>

<pallas_src>
import functools

import jax
import jax.numpy as jnp
from jax.experimental import pallas as pl
from jax.experimental.pallas import tpu as pltpu


def _round_up(x: int, m: int) -> int:
    return ((x + m - 1) // m) * m


def _vmem_capacity_bytes() -> int:
    """Physical per-core VMEM; conservative (v7x-sized) fallback if query fails."""
    try:
        return int(pltpu.get_tpu_info().vmem_capacity_bytes)
    except Exception:
        return 64 * 1024 * 1024


def _layernorm_kernel(x_ref, gamma_ref, beta_ref, o_ref, *, eps: float, inv_d: float):
    # x_ref: (tile_rows, d_pad); gamma/beta: (1, d_pad); broadcast along rows.
    x = x_ref[...].astype(jnp.float32)
    # Fused single-pass statistics in f32.  Padded lanes (if any) are zero, so the sums
    # are exact; we divide by the true d_model via the static inv_d.
    s = jnp.sum(x, axis=-1, keepdims=True)
    ss = jnp.sum(x * x, axis=-1, keepdims=True)
    mean = s * inv_d
    var = jnp.maximum(ss * inv_d - mean * mean, 0.0)  # biased variance (PyTorch LN)
    inv = jax.lax.rsqrt(var + eps)
    y = (x - mean) * inv
    y = y * gamma_ref[...].astype(jnp.float32) + beta_ref[...].astype(jnp.float32)
    o_ref[...] = y.astype(o_ref.dtype)


def transformer_layer_norm(x, gamma, beta, *, eps: float = 1e-5, tile_rows: int | None = None):
    """LayerNorm over the last dimension of x with shape (batch, seq, d_model)."""
    b, s, d = x.shape
    rows = b * s
    itemsize = jnp.dtype(x.dtype).itemsize

    # Sub-32-bit dtypes pack along sublanes -> larger row alignment.
    row_align = max(8, 32 // itemsize)
    # Lane-dense output: pad d_model up to a multiple of 128 only when necessary
    # (no-op for typical transformer widths).
    d_pad = _round_up(d, 128)
    needs_lane_pad = d_pad != d

    vmem_cap = _vmem_capacity_bytes()
    # Raise the scoped VMEM limit but leave headroom for compiler scratch.
    vmem_limit = min(max(vmem_cap - (16 << 20), 32 << 20), 100 << 20)

    if tile_rows is None:
        # Per-row VMEM footprint: double-buffered x-in + out tiles, plus ~3 f32
        # intermediates for the tile currently being computed.
        per_row = d_pad * (4 * itemsize + 3 * 4)
        tile_rows = min(max(int(0.6 * vmem_limit) // per_row, row_align), 2048)

    tile_rows = max(row_align, (tile_rows // row_align) * row_align)
    # Prefer >=2 grid steps so the (parallel) row axis can shard across the two
    # TensorCores of a v7x megacore even for modest inputs.
    half_rows = _round_up(max(rows, 1), 2 * row_align) // 2
    tile_rows = max(row_align, min(tile_rows, half_rows))

    grid = (pl.cdiv(rows, tile_rows),)

    x2 = x.reshape(rows, d)
    gamma2 = gamma.reshape(1, d)
    beta2 = beta.reshape(1, d)
    if needs_lane_pad:
        # Zero lane padding keeps sum / sum-of-squares exact; padded output lanes are
        # sliced off below, so gamma/beta pad values are irrelevant (use 1 / 0 anyway).
        x2 = jnp.pad(x2, ((0, 0), (0, d_pad - d)))
        gamma2 = jnp.pad(gamma2, ((0, 0), (0, d_pad - d)), constant_values=1)
        beta2 = jnp.pad(beta2, ((0, 0), (0, d_pad - d)))

    out = pl.pallas_call(
        functools.partial(_layernorm_kernel, eps=float(eps), inv_d=1.0 / float(d)),
        out_shape=jax.ShapeDtypeStruct((rows, d_pad), x.dtype),
        grid_spec=pltpu.PrefetchScalarGridSpec(
            num_scalar_prefetch=0,
            grid=grid,
            in_specs=[
                pl.BlockSpec((tile_rows, d_pad), lambda i: (i, 0)),
                pl.BlockSpec((1, d_pad), lambda i: (0, 0)),  # gamma: constant block
                pl.BlockSpec((1, d_pad), lambda i: (0, 0)),  # beta: constant block
            ],
            out_specs=pl.BlockSpec((tile_rows, d_pad), lambda i: (i, 0)),
        ),
        compiler_params=pltpu.CompilerParams(
            dimension_semantics=("parallel",),
            vmem_limit_bytes=int(vmem_limit),
        ),
    )(x2, gamma2, beta2)

    if needs_lane_pad:
        out = out[:, :d]
    return out.reshape(b, s, d)


if __name__ == "__main__":
    batch, seq, d_model = 2, 8, 32
    eps = 1e-5

    key = jax.random.PRNGKey(0)
    kx, kg, kb = jax.random.split(key, 3)
    x = jax.random.normal(kx, (batch, seq, d_model), dtype=jnp.float32)
    # Non-trivial affine parameters to exercise gamma/beta paths deterministically.
    gamma = 1.0 + 0.1 * jax.random.normal(kg, (d_model,), dtype=jnp.float32)
    beta = 0.1 * jax.random.normal(kb, (d_model,), dtype=jnp.float32)

    y = transformer_layer_norm(x, gamma, beta, eps=eps)
    y = jax.block_until_ready(y)

    # Pure-JAX reference (matches torch.nn.LayerNorm: biased variance, eps inside sqrt).
    mean = jnp.mean(x, axis=-1, keepdims=True)
    var = jnp.mean((x - mean) ** 2, axis=-1, keepdims=True)
    y_ref = (x - mean) / jnp.sqrt(var + eps) * gamma + beta
    assert jnp.allclose(y, y_ref, atol=1e-5, rtol=1e-5), "mismatch vs reference"

    print("KERNEL_OK")
</pallas_src>

<mosaic_0001>
module attributes {stable_mosaic.version = 11 : i64} {
  func.func @_layernorm_kernel(%arg0: i32, %arg1: memref<8x128xf32, #tpu.memory_space<vmem>>, %arg2: memref<1x128xf32, #tpu.memory_space<vmem>>, %arg3: memref<1x128xf32, #tpu.memory_space<vmem>>, %arg4: memref<8x128xf32, #tpu.memory_space<vmem>>) attributes {dimension_semantics = [#tpu.dimension_semantics<parallel>], iteration_bounds = array<i64: 2>, scalar_prefetch = 0 : i64, scratch_operands = 0 : i64, tpu.core_type = #tpu.core_type<tc>, window_params = [{transform_indices = @transform_0, window_bounds = array<i64: 8, 128>}, {pipeline_mode = #tpu.pipeline_mode<synchronous>, transform_indices = @transform_1, window_bounds = array<i64: 1, 128>}, {pipeline_mode = #tpu.pipeline_mode<synchronous>, transform_indices = @transform_2, window_bounds = array<i64: 1, 128>}, {transform_indices = @transform_3, window_bounds = array<i64: 8, 128>}]} {
    %c0 = arith.constant 0 : index
    %c0_0 = arith.constant 0 : index
    %0 = vector.load %arg1[%c0, %c0_0] : memref<8x128xf32, #tpu.memory_space<vmem>>, vector<8x128xf32>
    %cst = arith.constant dense<0.000000e+00> : vector<8xf32>
    %1 = vector.multi_reduction <add>, %0, %cst [1] : vector<8x128xf32> to vector<8xf32>
    %2 = vector.shape_cast %1 : vector<8xf32> to vector<8x1xf32>
    %3 = arith.mulf %0, %0 : vector<8x128xf32>
    %cst_1 = arith.constant dense<0.000000e+00> : vector<8xf32>
    %4 = vector.multi_reduction <add>, %3, %cst_1 [1] : vector<8x128xf32> to vector<8xf32>
    %5 = vector.shape_cast %4 : vector<8xf32> to vector<8x1xf32>
    %cst_2 = arith.constant 3.125000e-02 : f32
    %6 = vector.broadcast %cst_2 : f32 to vector<8x1xf32>
    %7 = arith.mulf %2, %6 : vector<8x1xf32>
    %cst_3 = arith.constant 3.125000e-02 : f32
    %8 = vector.broadcast %cst_3 : f32 to vector<8x1xf32>
    %9 = arith.mulf %5, %8 : vector<8x1xf32>
    %10 = arith.mulf %7, %7 : vector<8x1xf32>
    %11 = arith.subf %9, %10 : vector<8x1xf32>
    %cst_4 = arith.constant 0.000000e+00 : f32
    %12 = vector.broadcast %cst_4 : f32 to vector<8x1xf32>
    %13 = arith.maximumf %11, %12 : vector<8x1xf32>
    %cst_5 = arith.constant 9.99999974E-6 : f32
    %14 = vector.broadcast %cst_5 : f32 to vector<8x1xf32>
    %15 = arith.addf %13, %14 : vector<8x1xf32>
    %16 = math.rsqrt %15 : vector<8x1xf32>
    %17 = vector.broadcast %7 : vector<8x1xf32> to vector<8x128xf32>
    %18 = arith.subf %0, %17 : vector<8x128xf32>
    %19 = vector.broadcast %16 : vector<8x1xf32> to vector<8x128xf32>
    %20 = arith.mulf %18, %19 : vector<8x128xf32>
    %c0_6 = arith.constant 0 : index
    %c0_7 = arith.constant 0 : index
    %21 = vector.load %arg2[%c0_6, %c0_7] : memref<1x128xf32, #tpu.memory_space<vmem>>, vector<1x128xf32>
    %22 = vector.broadcast %21 : vector<1x128xf32> to vector<8x128xf32>
    %23 = arith.mulf %20, %22 : vector<8x128xf32>
    %c0_8 = arith.constant 0 : index
    %c0_9 = arith.constant 0 : index
    %24 = vector.load %arg3[%c0_8, %c0_9] : memref<1x128xf32, #tpu.memory_space<vmem>>, vector<1x128xf32>
    %25 = vector.broadcast %24 : vector<1x128xf32> to vector<8x128xf32>
    %26 = arith.addf %23, %25 : vector<8x128xf32>
    %c0_10 = arith.constant 0 : index
    %c0_11 = arith.constant 0 : index
    %27 = vector.load %arg4[%c0_10, %c0_11] : memref<8x128xf32, #tpu.memory_space<vmem>>, vector<8x128xf32>
    tpu.vector_store %arg4[%c0_10, %c0_11], %26 {strides = array<i32>} : memref<8x128xf32, #tpu.memory_space<vmem>>, vector<8x128xf32>,
    return
  }
  func.func @transform_0(%arg0: i32) -> (i32, i32) {
    %c0_i32 = arith.constant 0 : i32
    %c0_i32_0 = arith.constant 0 : i32
    return %arg0, %c0_i32 : i32, i32
  }
  func.func @transform_1(%arg0: i32) -> (i32, i32) {
    %c0_i32 = arith.constant 0 : i32
    %c0_i32_0 = arith.constant 0 : i32
    %c0_i32_1 = arith.constant 0 : i32
    return %c0_i32, %c0_i32_0 : i32, i32
  }
  func.func @transform_2(%arg0: i32) -> (i32, i32) {
    %c0_i32 = arith.constant 0 : i32
    %c0_i32_0 = arith.constant 0 : i32
    %c0_i32_1 = arith.constant 0 : i32
    return %c0_i32, %c0_i32_0 : i32, i32
  }
  func.func @transform_3(%arg0: i32) -> (i32, i32) {
    %c0_i32 = arith.constant 0 : i32
    %c0_i32_0 = arith.constant 0 : i32
    return %arg0, %c0_i32 : i32, i32
  }
}

</mosaic_0001>

<bundles_post_ra>
// kernel: tpu_custom_call.1
= control target key start
LH: loop header
LB: loop body
LE: loop exit
PB: predicated region body
PF: predicated region fallthrough
CT: control target
= control target key end

     0   :  { %8 = vsyncpa [#allocation3], 0  ;;  %s627_s0 = inlined_call_operand.hbm [shape: f32[16,128], index: 0, kind: input, shape index: {}]   ;;  %s628_s1 = inlined_call_operand.vmem [shape: f32[1,128], index: 1, kind: input, shape index: {}]   ;;  %s629_s2 = inlined_call_operand.vmem [shape: f32[1,128], index: 2, kind: input, shape index: {}]   ;;  %s630_s3 = inlined_call_operand.hbm [shape: f32[16,128], index: 3, kind: output, shape index: {}]  }
   0x1   :  { %10 = vsyncpa [#allocation3 + $0x1], 0 }
   0x2   :  { %11 = vsyncpa [#allocation4], 0 }
   0x3   :  { %13 = vsyncpa [#allocation4 + $0x1], 0  ;;  %s480_s12 = smov 0   ;;  %s482_s13 = smov 0  }
   0x4   :  { %s484_s14 = smov 0   ;;  %s486_s15 = smov 0  }
   0x5 LB: > { %s501_s16 = sadd.s32 4294967295, %s456_s15   ;;  %s302_s17 = sadd.s32 4294967294, %s456_s15   ;;  %s456_s15 = sphi %s486_s15, %s647_s15   ;;  %s452_s14 = sphi %s484_s14, %s646_s14   ;;  %s448_s13 = sphi %s482_s13, %s645_s13   ;;  %s444_s12 = sphi %s480_s12, %s644_s12  }
   0x6   : > { %s505_s18 = sadd.s32 1, %s456_s15   ;;  %s26_s19 = sadd.s32 1, %s452_s14 }
   0x7   : > { %s23_s20 = ssub.s32 %s456_s15, %s505_s18  ;;  %p33_p0 = scmp.ne.s32.totalorder %s452_s14, %s448_s13 }
   0x8   : > { %p24_p1 = scmp.eq.s32.totalorder %s23_s20, 0  ;;  %p34_p2 = scmp.eq.s32.totalorder %s456_s15, 0 }
   0x9   : > { %p39_p3 = scmp.ne.s32.totalorder %s448_s13, %s444_s12  ;;  %p40_p4 = scmp.eq.s32.totalorder %s501_s16, 0 }
   0xa   : > { %s517_s21 = scalar_select %p24_p1, %s452_s14, %s26_s19  }
   0xb   : > { %p519_p5 = por %p34_p2, %p33_p0  ;;  %p523_p6 = por %p40_p4, %p39_p3 }
   0xc   : > { %p105_p7 = scmp.eq.s32.totalorder %s501_s16, 1  ;;  %p111_p8 = scmp.eq.s32.totalorder %s302_s17, 1 }
   0xd   : > { %s634_s23 = scalar_select %p523_p6, 1, 0 }
   0xe   : > { %p328_p10 = scmp.lt.s32.totalorder %s456_s15, 2  ;;  %p530_p11 = por %p105_p7, %p33_p0 }
   0xf   : > { %p534_p12 = por %p111_p8, %p39_p3  ;;  %s137_s26 = sand.u32 1, %s452_s14  }
  0x10   : > { %s635_s24 = scalar_select %p530_p11, 1, 0 }
  0x11   : > { %s636_s25 = scalar_select %p534_p12, 1, 0 }
  0x12   : > { %s306_s27 = sshll.u32 %s456_s15, 7  ;;  %s305_s28 = sshll.u32 %s137_s26, 3 }
  0x13   : > { %s543_s4 = scalar_lea.hbm %s627_s0, %s306_s27  ;;  %s141_s5 = scalar_lea.vmem [#allocation2], %s305_s28 }
  0x14   : > { %s148_s6 = sshll.u32 %s141_s5, 4  ;;  %p547_p13 = pnand %p328_p10, %p519_p5  ;;  %s551_s6 = int_to_ptr.vmem [resolvable:$true] %s148_s6 }
  0x15   : > { %s138_s8 = scalar_lea.sflag [#allocation3], %s137_s26  ;;  %s364_s9 = scalar_lea.hbm %s543_s4, 128 }
  0x16   : > { %p365_p2 = scmp.ne.s32.totalorder %s543_s4, %s364_s9  ;;  %p366_p3 = pneg %p547_p13 }
  0x17   : > { %s369_s17 = scalar_lea.hbm %s627_s0, 256  ;;  %p370_p5 = scmp.lt.s32.totalorder %s543_s4, %s627_s0 }
  0x18   : > { %p367_p4 = pnand %p366_p3, %p365_p2  ;;  %p371_p8 = scmp.lt.s32.totalorder %s369_s17, %s364_s9 }
  0x1a   : > { %p368_p7 = pneg %p367_p4  ;;  %p372_p10 = por %p371_p8, %p370_p5 }
  0x1c   : > { %p373_p9 = pnand %p372_p10, %p368_p7 }
  0x1e   : > { %376 = shalt.err (!%p373_p9)
}
  0x1f   : > { %s377_s22 = scalar_lea.vmem %s551_s6, 128  ;;  %s458_s26 = smov [#allocation2]  }
  0x20   : > { %p378_p0 = scmp.ne.s32.totalorder %s551_s6, %s377_s22  ;;  %s382_s27 = sshll.u32 %s458_s26, 4  ;;  %s383_s27 = int_to_ptr.vmem [resolvable:$false] %s382_s27 }
  0x21   : > { %s384_s28 = scalar_lea.vmem %s383_s27, 256  ;;  %p385_p4 = scmp.lt.s32.totalorder %s551_s6, %s383_s27 }
  0x22   : > { %p380_p1 = pnand %p378_p0, %p366_p3  ;;  %p386_p12 = scmp.lt.s32.totalorder %s384_s28, %s377_s22 }
  0x24   : > { %p381_p2 = pneg %p380_p1  ;;  %p387_p11 = por %p386_p12, %p385_p4 }
  0x26   : > { %p388_p6 = pnand %p387_p11, %p381_p2 }
  0x28   : > { %391 = shalt.err (!%p388_p6)
}
  0x29   : > { %323 = dma.hbm_to_vmem [thread:$0]  (!%p547_p13), %s543_s4, 128, %s551_s6, %s138_s8  }
  0x2a   : > { %p638_p9 = scmp.lt.s32.totalorder %s456_s15, 3  ;;  %p639_p7 = scmp.ge.s32.totalorder %s456_s15, 1 }
  0x2c   : > { %p154_p0 = pnand %p639_p7, %p638_p9 }
  0x2d   : > { %s578_s29 = sand.u32 (!%p154_p0), 1, %s448_s13   ;;  %p640_p6 = scmp.ne.s32.totalorder (!%p154_p0), %s634_s23, 0 }
  0x2e   : > { %157 = sbr.rel (%p154_p0) target bundleno = 236 (0xec), region = 32  ;;  %s308_s30 = sshll.u32 (!%p154_p0), %s578_s29, 3 }
  0x2f   : > { %s160_s5 = scalar_lea.sflag (!%p154_p0), [#allocation3], %s578_s29  ;;  %s163_s9 = scalar_lea.vmem (!%p154_p0), [#allocation2], %s308_s30 }
  0x33   : > { %435 = dma.done.wait (%p640_p6), %s160_s5, 128  }
  0x34   : > { %437 = vsyncadd (%p640_p6), %s160_s5, 4294967168  ;;  %v186_v0 = vld [vmem:[%s163_s9] sm:$0xff]  ;;  %s313_s8 = sshll.u32 %s501_s16, 7  ;;  %s185_s10 = scalar_lea.vmem [#allocation5], %s308_s30 }
  0x35   : > { %187 = vadd.xlane.f32.xlu0 %v186_v0  ;;  %v189_v1 = vmul.f32 %v186_v0, %v186_v0  ;;  %v310_v12 = vld [vmem:[%s628_s1] ss:$0 sm:$0xff]  ;;  %s232_s11 = sshll.u32 %s185_s10, 4  ;;  %s230_s20 = scalar_lea.hbm %s630_s3, %s313_s8  ;;  %s233_s11 = int_to_ptr.vmem [resolvable:$true] %s232_s11 }
  0x36   : > { %v311_v14 = vld [vmem:[%s629_s2] ss:$0 sm:$0xff]  ;;  %s219_s22 = scalar_lea.sflag [#allocation4], %s578_s29  ;;  %s392_s26 = scalar_lea.vmem %s233_s11, 128 }
  0x37   : > { %p393_p11 = scmp.ne.s32.totalorder %s233_s11, %s392_s26  ;;  %p641_p12 = scmp.ne.s32.totalorder %s635_s24, 0 }
  0x38   : > { %s459_s27 = smov [#allocation5]  }
  0x39   : > { %190 = vadd.xlane.f32.xlu0 %v189_v1  ;;  %p394_p13 = pnand %p393_p11, %p641_p12  ;;  %s396_s28 = sshll.u32 %s459_s27, 4  ;;  %s397_s28 = int_to_ptr.vmem [resolvable:$false] %s396_s28 }
  0x3a   : > { %s398_s16 = scalar_lea.vmem %s397_s28, 256  ;;  %p399_p3 = scmp.lt.s32.totalorder %s233_s11, %s397_s28 }
  0x3b   : > { %p395_p1 = pneg %p394_p13  ;;  %p400_p5 = scmp.lt.s32.totalorder %s398_s16, %s392_s26 }
  0x3d   : > { %p401_p8 = por %p400_p5, %p399_p3 }
  0x3f   : > { %p402_p10 = pnand %p401_p8, %p395_p1 }
  0xbe   : > { %v188_v2 = vpop.xlane.xlu0 %187 }
  0xbf   : > { %v192_v3 = vmul.f32 0.03125, %v188_v2 }
  0xc1   : > { %v194_v5 = vmul.f32 %v192_v3, %v192_v3  ;;  %v199_v10 = vsub.f32 %v186_v0, %v192_v3 }
  0xc2   : > { %v191_v4 = vpop.xlane.xlu0 %190 }
  0xc3   : > { %v193_v6 = vmul.f32 0.03125, %v191_v4 }
  0xc5   : > { %v195_v7 = vsub.f32 %v193_v6, %v194_v5 }
  0xc7   : > { %v196_v8 = vmax.f32 %v195_v7, 0.0 }
  0xc9   : > { %v197_v9 = vadd.f32 1e-05, %v196_v8 }
  0xcb   : > { %362 = vrsqrt.f32 %v197_v9 }
  0xd8   : > { %v363_v11 = vpop.eup %362 }
  0xd9   : > { %v200_v13 = vmul.f32 %v363_v11, %v199_v10 }
  0xdb   : > { %v208_v15 = vmul.f32 %v310_v12, %v200_v13 }
  0xdd   : > { %v216_v16 = vadd.f32 %v311_v14, %v208_v15 }
  0xdf   : > { %217 = vst [vmem:[%s185_s10] sm:$0xff] %v216_v16 }
  0xe0   : > { %405 = shalt.err (!%p402_p10)
}
  0xe1   : > { %s406_s30 = scalar_lea.hbm %s230_s20, 128  ;;  %s410_s9 = scalar_lea.hbm %s630_s3, 256 }
  0xe2   : > { %p407_p2 = scmp.ne.s32.totalorder %s230_s20, %s406_s30  ;;  %p411_p7 = scmp.lt.s32.totalorder %s230_s20, %s630_s3 }
  0xe3   : > { %p412_p0 = scmp.lt.s32.totalorder %s410_s9, %s406_s30 }
  0xe4   : > { %p408_p4 = pnand %p407_p2, %p641_p12 }
  0xe5   : > { %p413_p6 = por %p412_p0, %p411_p7 }
  0xe6   : > { %p409_p9 = pneg %p408_p4 }
  0xe8   : > { %p414_p11 = pnand %p413_p6, %p409_p9 }
  0xea   : > { %417 = shalt.err (!%p414_p11)
}
  0xeb   : > { %318 = dma.vmem_to_hbm [thread:$0]  (%p641_p12), %s233_s11, 128, %s230_s20, %s219_s22  }
  0xec PF: > { %s244_s6 = sand.u32 1, %s444_s12   ;;  %p642_p13 = scmp.ne.s32.totalorder %s636_s25, 0 }
  0xed   : > { %p643_p1 = scmp.ge.s32.totalorder %s456_s15, 2  ;;  %s245_s7 = scalar_lea.sflag [#allocation4], %s244_s6 }
  0xef   : > { %p325_p3 = pnand %p643_p1, %p642_p13 }
  0xf1   : > { %p326_p5 = pneg %p325_p3 }
  0xf3   : > { %439 = dma.done.wait (%p326_p5), %s245_s7, 128  }
  0xf4   : > { %441 = vsyncadd (%p326_p5), %s245_s7, 4294967168  ;;  %p16_p8 = scmp.ge.s32.totalorder %s505_s18, 4   ;;  %s644_s12 = smov %s448_s13 }
  0xf5   : > { %s645_s13 = smov %s452_s14  ;;  %s646_s14 = smov %s517_s21 }
  0xf6   : > { %s647_s15 = smov %s505_s18  ;;  %18 = sbr.rel (!%p16_p8) target bundleno = 5 (0x5), region = 77 }
  0xfb   :  { %250 = vsyncpa [#allocation3], 1 }
  0xfc   :  { %252 = vsyncpa [#allocation3 + $0x1], 1 }
  0xfd   :  { %253 = vsyncpa [#allocation4], 1 }
  0xfe   :  { %255 = vsyncpa [#allocation4 + $0x1], 1 }

</bundles_post_ra>
